<compile_context>
chip_gen: v6e
topology: v6e:2x2x1
jax: 0.10.0
libtpu: 0.0.40
codegen_flags: <defaults>
</compile_context>

<pallas_src>
import functools

import jax
import jax.numpy as jnp
from jax.experimental import pallas as pl
from jax.experimental.pallas import tpu as pltpu


def _round_up(x, m):
    return ((x + m - 1) // m) * m


def _cdiv(a, b):
    return (a + b - 1) // b


def _linear_kernel(x_ref, w_ref, b_ref, o_ref):
    # x_ref: (tm, tk)  input-rows tile (compute dtype, e.g. bf16)
    # w_ref: (tk, tn)  pre-transposed weight tile (F_in, F_out layout)
    # b_ref: (1,  tn)  bias tile (f32)
    # o_ref: (tm, tn)  f32 output tile; resident across the K grid axis and
    #                  used directly as the accumulator (no extra scratch).
    k = pl.program_id(2)
    partial = jnp.dot(x_ref[...], w_ref[...], preferred_element_type=jnp.float32)

    @pl.when(k == 0)
    def _():
        o_ref[...] = partial + b_ref[...]

    @pl.when(k != 0)
    def _():
        o_ref[...] += partial


@functools.partial(jax.jit, static_argnames=("tm", "tn", "tk", "compute_dtype"))
def fcn_forward(x, mask, weight, bias, *, tm=512, tn=256, tk=2048,
                compute_dtype=jnp.bfloat16):
    """Pallas implementation of FCN.forward.

    x:      [B, T, in_features]
    mask:   ignored (kept to mirror the PyTorch signature)
    weight: [out_features, in_features]  (PyTorch nn.Linear layout)
    bias:   [out_features]
    returns [B, T, out_features]  (float32)
    """
    del mask  # forward() ignores the mask, exactly like the PyTorch module
    B, T, F_in = x.shape
    F_out = weight.shape[0]
    N_rows = B * T

    # --- K (contraction) tiling: prefer a single full-K block; only zero-pad
    #     K if F_in exceeds the cap and doesn't divide evenly (garbage along K
    #     would corrupt real rows, so K must be exact or zero-padded).
    if F_in <= tk:
        tk_eff, Fi_pad = F_in, F_in
    else:
        tk_eff = tk
        Fi_pad = _round_up(F_in, tk_eff)

    # --- N (output-features) tiling: lane-dense 128-multiple blocks when
    #     possible; otherwise one full-width block (masked stores, no column
    #     padding and no post-kernel slice).
    tn_eff = min(tn, F_out) if (F_out % 128 == 0) else F_out
    grid_n = _cdiv(F_out, tn_eff)

    # --- M (rows) tiling: no padding; the ragged last tile's extra rows are
    #     dropped by Pallas' masked output stores.
    tm_eff = min(tm, _round_up(N_rows, 8))
    # v7x has 2 TensorCores: if N is a single tile, make sure M has >=2
    # parallel tiles so both cores get work.
    if grid_n == 1 and N_rows >= 512:
        tm_eff = min(tm_eff, _round_up(_cdiv(N_rows, 2), 256))
    grid_m = _cdiv(N_rows, tm_eff)
    grid_k = _cdiv(Fi_pad, tk_eff)

    # --- Operand prep (outside the kernel; weight transpose + cast are cheap
    #     vs the x stream and fuse under jit).  In a real pipeline the
    #     producer should emit bf16 x directly so the cast fuses away.
    x2d = x.reshape(N_rows, F_in).astype(compute_dtype)
    w_t = weight.T.astype(compute_dtype)                 # (F_in, F_out)
    if Fi_pad != F_in:
        x2d = jnp.pad(x2d, ((0, 0), (0, Fi_pad - F_in)))  # zeros are safe on K
        w_t = jnp.pad(w_t, ((0, Fi_pad - F_in), (0, 0)))
    b2d = bias.reshape(1, F_out).astype(jnp.float32)

    itemsize = jnp.dtype(compute_dtype).itemsize
    cost = pl.CostEstimate(
        flops=2 * N_rows * F_in * F_out,
        transcendentals=0,
        bytes_accessed=(x2d.size + w_t.size) * itemsize
        + b2d.size * 4
        + N_rows * F_out * 4,
    )

    out2d = pl.pallas_call(
        _linear_kernel,
        out_shape=jax.ShapeDtypeStruct((N_rows, F_out), jnp.float32),
        grid_spec=pltpu.PrefetchScalarGridSpec(
            num_scalar_prefetch=0,
            grid=(grid_m, grid_n, grid_k),
            in_specs=[
                pl.BlockSpec((tm_eff, tk_eff), lambda i, j, k: (i, k)),  # x
                pl.BlockSpec((tk_eff, tn_eff), lambda i, j, k: (k, j)),  # W^T
                pl.BlockSpec((1, tn_eff), lambda i, j, k: (0, j)),       # bias
            ],
            out_specs=pl.BlockSpec((tm_eff, tn_eff), lambda i, j, k: (i, j)),
        ),
        compiler_params=pltpu.CompilerParams(
            dimension_semantics=("parallel", "parallel", "arbitrary"),
        ),
        cost_estimate=cost,
    )(x2d, w_t, b2d)

    return out2d.reshape(B, T, F_out)


if __name__ == "__main__":
    # Small, deterministic synthetic setup (no checkpoints).
    B, T = 2, 8
    in_features, out_features = 32, 16

    key = jax.random.PRNGKey(0)
    kx, kw, kb, km = jax.random.split(key, 4)

    x = jax.random.normal(kx, (B, T, in_features), dtype=jnp.float32)
    mask = (jax.random.uniform(km, (B, T)) > 0.5).astype(jnp.float32)  # unused
    # nn.Linear shapes: weight (out_features, in_features), bias (out_features,)
    weight = jax.random.normal(kw, (out_features, in_features), dtype=jnp.float32) * 0.1
    bias = jax.random.normal(kb, (out_features,), dtype=jnp.float32) * 0.1

    out = fcn_forward(x, mask, weight, bias)
    out = jax.block_until_ready(out)
    assert out.shape == (B, T, out_features)

    # Reference 1: plain f32 nn.Linear math (bf16-feed tolerance).
    ref = x @ weight.T + bias
    err = float(jnp.max(jnp.abs(out - ref)))
    assert jnp.allclose(out, ref, atol=2e-2, rtol=2e-2), err

    # Reference 2: same bf16-feed / f32-accumulate math as the kernel (tight).
    ref_bf16 = jnp.dot(
        x.astype(jnp.bfloat16),
        weight.T.astype(jnp.bfloat16),
        preferred_element_type=jnp.float32,
    ) + bias
    assert jnp.allclose(out, ref_bf16, atol=1e-4, rtol=1e-4)

    print("KERNEL_OK")
</pallas_src>

<mosaic_0001>
module attributes {stable_mosaic.version = 11 : i64} {
  func.func @_linear_kernel(%arg0: i32, %arg1: i32, %arg2: i32, %arg3: memref<16x32xbf16, #tpu.memory_space<vmem>>, %arg4: memref<32x16xbf16, #tpu.memory_space<vmem>>, %arg5: memref<1x16xf32, #tpu.memory_space<vmem>>, %arg6: memref<16x16xf32, #tpu.memory_space<vmem>>) attributes {dimension_semantics = [#tpu.dimension_semantics<parallel>, #tpu.dimension_semantics<parallel>, #tpu.dimension_semantics<arbitrary>], iteration_bounds = array<i64: 1, 1, 1>, scalar_prefetch = 0 : i64, scratch_operands = 0 : i64, tpu.core_type = #tpu.core_type<tc>, window_params = [{transform_indices = @transform_0, window_bounds = array<i64: 16, 32>}, {transform_indices = @transform_1, window_bounds = array<i64: 32, 16>}, {transform_indices = @transform_2, window_bounds = array<i64: 1, 16>}, {transform_indices = @transform_3, window_bounds = array<i64: 16, 16>}]} {
    %c0 = arith.constant 0 : index
    %c0_0 = arith.constant 0 : index
    %0 = vector.load %arg3[%c0, %c0_0] : memref<16x32xbf16, #tpu.memory_space<vmem>>, vector<16x32xbf16>
    %c0_1 = arith.constant 0 : index
    %c0_2 = arith.constant 0 : index
    %1 = vector.load %arg4[%c0_1, %c0_2] : memref<32x16xbf16, #tpu.memory_space<vmem>>, vector<32x16xbf16>
    %cst = arith.constant dense<0.000000e+00> : vector<16x16xf32>
    %2 = tpu.matmul %0, %1, %cst {dimension_numbers = #tpu.dot_dimension_numbers<[1], [0], [0], [1], [0, 0, 1, 1], [], []>} : vector<16x32xbf16>, vector<32x16xbf16>, vector<16x16xf32> -> vector<16x16xf32>
    %c0_i32 = arith.constant 0 : i32
    %3 = arith.cmpi eq, %arg2, %c0_i32 : i32
    %4 = arith.extui %3 : i1 to i32
    %c0_i32_3 = arith.constant 0 : i32
    %5 = arith.cmpi ne, %4, %c0_i32_3 : i32
    scf.if %5 {
      %c0_6 = arith.constant 0 : index
      %c0_7 = arith.constant 0 : index
      %9 = vector.load %arg5[%c0_6, %c0_7] : memref<1x16xf32, #tpu.memory_space<vmem>>, vector<1x16xf32>
      %10 = vector.broadcast %9 : vector<1x16xf32> to vector<16x16xf32>
      %11 = arith.addf %2, %10 : vector<16x16xf32>
      %c0_8 = arith.constant 0 : index
      %c0_9 = arith.constant 0 : index
      %12 = vector.load %arg6[%c0_8, %c0_9] : memref<16x16xf32, #tpu.memory_space<vmem>>, vector<16x16xf32>
      tpu.vector_store %arg6[%c0_8, %c0_9], %11 {strides = array<i32>} : memref<16x16xf32, #tpu.memory_space<vmem>>, vector<16x16xf32>,
    } else {
    }
    %c0_i32_4 = arith.constant 0 : i32
    %6 = arith.cmpi ne, %arg2, %c0_i32_4 : i32
    %7 = arith.extui %6 : i1 to i32
    %c0_i32_5 = arith.constant 0 : i32
    %8 = arith.cmpi ne, %7, %c0_i32_5 : i32
    scf.if %8 {
      %c0_6 = arith.constant 0 : index
      %c0_7 = arith.constant 0 : index
      %9 = vector.load %arg6[%c0_6, %c0_7] : memref<16x16xf32, #tpu.memory_space<vmem>>, vector<16x16xf32>
      %10 = arith.addf %9, %2 : vector<16x16xf32>
      %c0_8 = arith.constant 0 : index
      %c0_9 = arith.constant 0 : index
      %11 = vector.load %arg6[%c0_8, %c0_9] : memref<16x16xf32, #tpu.memory_space<vmem>>, vector<16x16xf32>
      tpu.vector_store %arg6[%c0_8, %c0_9], %10 {strides = array<i32>} : memref<16x16xf32, #tpu.memory_space<vmem>>, vector<16x16xf32>,
    } else {
    }
    return
  }
  func.func @transform_0(%arg0: i32, %arg1: i32, %arg2: i32) -> (i32, i32) {
    %c0_i32 = arith.constant 0 : i32
    return %arg0, %arg2 : i32, i32
  }
  func.func @transform_1(%arg0: i32, %arg1: i32, %arg2: i32) -> (i32, i32) {
    %c0_i32 = arith.constant 0 : i32
    return %arg2, %arg1 : i32, i32
  }
  func.func @transform_2(%arg0: i32, %arg1: i32, %arg2: i32) -> (i32, i32) {
    %c0_i32 = arith.constant 0 : i32
    %c0_i32_0 = arith.constant 0 : i32
    return %c0_i32, %arg1 : i32, i32
  }
  func.func @transform_3(%arg0: i32, %arg1: i32, %arg2: i32) -> (i32, i32) {
    %c0_i32 = arith.constant 0 : i32
    return %arg0, %arg1 : i32, i32
  }
}

</mosaic_0001>

<bundles_post_ra>
// kernel: fcn_forward.1
= control target key start
LH: loop header
LB: loop body
LE: loop exit
PB: predicated region body
PF: predicated region fallthrough
CT: control target
= control target key end

     0   :  { %v173_v1 = vmov 0.0   ;;  %vm174_vm0 = vmmov 0   ;;  %s213_s0 = inlined_call_operand.vmem [shape: bf16[16,32], index: 0, kind: input, shape index: {}]   ;;  %s214_s1 = inlined_call_operand.vmem [shape: bf16[32,16], index: 1, kind: input, shape index: {}]   ;;  %s215_s2 = inlined_call_operand.vmem [shape: f32[1,16], index: 2, kind: input, shape index: {}]   ;;  %s216_s3 = inlined_call_operand.hbm [shape: f32[16,16], index: 3, kind: output, shape index: {}]  }
   0x1   :  { %v148_v0 = vld [vmem:[%s214_s1 + $0x8] sm:$0xff]   ;;  %135 = vmatprep.subr.bf16.mxu0 %v173_v1  ;;  %v149_v2 = vld [vmem:[%s214_s1] sm:$0xff]   ;;  %139 = vmatprep.mubr.msk.bf16.mxu0 %vm174_vm0, %v173_v1 }
   0x2   :  { %136 = vmatpush3.bf16.msra.mxu0 %v148_v0 }
   0x3   :  { %137 = vmatprep.subr.bf16.mxu0 %v173_v1 }
   0x4   :  { %8 = vsyncpa [#allocation3], 0  ;;  %v150_v3 = vld [vmem:[%s213_s0] sm:$0xff]   ;;  %vm39_vm1 = vcmask 261120   ;;  %vm97_vm2 = vcmask 130048   ;;  %s175_s20 = smov [#allocation2]  }
   0x5   :  { %v131_v4 = vld [vmem:[%s215_s2] ss:$0 sm:$0xff]  ;;  %s116_s1 = sshll.u32 %s175_s20, 4  ;;  %s117_s1 = int_to_ptr.vmem [resolvable:$true] %s116_s1 }
   0x6   :  { %138 = vmatpush3.bf16.msra.mxu0 %v149_v2  ;;  %s151_s0 = scalar_lea.vmem %s117_s1, 256  ;;  %p156_p1 = scmp.lt.s32.totalorder %s117_s1, %s117_s1 }
   0x7   :  { %p152_p0 = scmp.ne.s32.totalorder %s117_s1, %s151_s0  ;;  %p157_p2 = scmp.lt.s32.totalorder %s151_s0, %s151_s0 }
   0x9   :  { %140 = vmatmul.mubr.msk.bf16.vlgmr.msra.gmra.mxu0 %vm39_vm1, %v150_v3  ;;  %p158_p3 = por %p157_p2, %p156_p1 }
   0xb   :  { %p159_p4 = pnand %p158_p3, %p152_p0 }
  0xc9   :  { %v77_v5 = vpop.f32.mrf.mxu0 }
  0xca   :  { %v95_v6 = vadd.f32 %v131_v4, %v77_v5 }
  0xcb   :  { %v141_v7 = vpop.f32.mrf.mxu0 }
  0xcc   :  { %98 = vst.msk [vmem:[#allocation2] sm:$0xff] %vm97_vm2, %v95_v6 }
  0xcd   :  { %v80_v8 = vpop.f32.mrf.mxu0 }
  0xce   :  { %v96_v9 = vadd.f32 %v131_v4, %v80_v8 }
  0xcf   :  { %v142_v10 = vpop.f32.mrf.mxu0 }
  0xd0   :  { %99 = vst.msk [vmem:[#allocation2 + $0x8] sm:$0xff] %vm97_vm2, %v96_v9 }
  0xd1   :  { %162 = shalt.err (!%p159_p4)
}
  0xd2   :  { %s176_s2 = smov 128   ;;  %s177_s21 = smov 8  }
  0xd3   :  { %122 = dma.vmem_to_hbm [thread:$0]  %s117_s1, 256, %s216_s3, [#allocation3], %s176_s2, %s176_s2, %s177_s21  }
  0xd4   :  { %171 = dma.done.wait [#allocation3], 256  }
  0xd5   :  { %172 = vsyncadd [#allocation3], 4294967040 }
  0xd6   :  { %126 = vsyncpa [#allocation3], 1 }

</bundles_post_ra>
